<compile_context>
chip_gen: v7x
topology: tpu7x:2x2x1
jax: 0.10.0
libtpu: 0.0.40
codegen_flags: <defaults>
</compile_context>

<pallas_src>
import math
from functools import partial
from typing import NamedTuple

import jax
import jax.numpy as jnp
from jax.experimental import pallas as pl
from jax.experimental.pallas import tpu as pltpu


def _round_up(x, m):
    return ((x + m - 1) // m) * m


def _device_kind():
    try:
        return jax.devices()[0].device_kind.lower()
    except Exception:
        return ""


def _is_v7(kind):
    return ("v7" in kind) or ("tpu7" in kind)


def _default_tiles(kind):
    # (tm, tn, tk) targets per generation; clamped to the problem later.
    if "v5" in kind:
        return 512, 512, 512       # ~240 flops/byte HBM/MXU crossover
    if "v6" in kind:
        return 1024, 1024, 1024    # 128 MiB VMEM, ~717 flops/byte crossover
    if _is_v7(kind):
        return 512, 512, 1024      # 64 MiB VMEM, ~311 flops/byte crossover
    return 512, 512, 1024


def _vmem_cap(kind):
    if _is_v7(kind):
        return 48 << 20            # 64 MiB physical on v7x
    return 96 << 20                # 128 MiB physical on v5e / v6e


def _dim_semantics(kind):
    if _is_v7(kind):
        # Shard M-tiles across v7x's two TensorCores; plain PARALLEL does not.
        return (pltpu.CORE_PARALLEL, pltpu.PARALLEL, pltpu.ARBITRARY)
    return (pltpu.PARALLEL, pltpu.PARALLEL, pltpu.ARBITRARY)


# ---------------------------------------------------------------------------
# Kernels
# ---------------------------------------------------------------------------

def _kernel_out_acc(x_ref, w_ref, b_ref, o_ref, *, scale):
    """f32 output: accumulate directly into the K-resident output block."""
    k = pl.program_id(2)

    @pl.when(k == 0)
    def _init():
        # Fold bias into the accumulator init: acc = b (broadcast over rows).
        o_ref[...] = jnp.broadcast_to(b_ref[...].astype(jnp.float32), o_ref.shape)

    o_ref[...] += jnp.dot(x_ref[...], w_ref[...],
                          preferred_element_type=jnp.float32)

    @pl.when(k == pl.num_programs(2) - 1)
    def _finalize():
        o_ref[...] = o_ref[...] * scale          # equalized-lr scale, in f32


def _kernel_scratch_acc(x_ref, w_ref, b_ref, o_ref, acc_ref, *, scale):
    """Sub-f32 output: f32 VMEM accumulator scratch, cast on finalize."""
    k = pl.program_id(2)

    @pl.when(k == 0)
    def _init():
        acc_ref[...] = jnp.broadcast_to(b_ref[...].astype(jnp.float32),
                                        acc_ref.shape)

    acc_ref[...] += jnp.dot(x_ref[...], w_ref[...],
                            preferred_element_type=jnp.float32)

    @pl.when(k == pl.num_programs(2) - 1)
    def _finalize():
        o_ref[...] = (acc_ref[...] * scale).astype(o_ref.dtype)


# ---------------------------------------------------------------------------
# Parameter preparation (done once, reused across forward calls)
# ---------------------------------------------------------------------------

class PreparedConstrainedLinear(NamedTuple):
    w_kn: jax.Array        # (Kp, Np) weight, (in, out) layout, compute dtype
    b_row: jax.Array       # (1, Np) bias, float32
    scale: float           # sqrt(2/fan_in) * lrMul  (or 1.0 if not equalized)
    in_features: int       # K
    out_features: int      # N
    tn: int
    tk: int
    compute_dtype: jnp.dtype


def prepare_constrained_linear(weight, bias, *, equalized=True, lr_mul=1.0,
                               compute_dtype="auto", tn=None, tk=None):
    """One-time param prep: transpose to (K, N), cast, zero-pad. Cache + reuse."""
    N, K = weight.shape
    assert bias.shape == (N,)

    kind = _device_kind()
    _, tn_d, tk_d = _default_tiles(kind)
    tn = tn_d if tn is None else tn
    tk = tk_d if tk is None else tk

    if compute_dtype == "auto":
        # bf16 compute (f32 accumulation) is the default fast path for f32 params.
        compute_dtype = jnp.bfloat16 if weight.dtype == jnp.float32 else weight.dtype
    compute_dtype = jnp.dtype(compute_dtype)

    # Full-extent blocks need no padding; otherwise keep HW-aligned tiles and
    # zero-pad the parameter once.  K padding is required for correctness of
    # the reduction; N padding only pollutes columns that get sliced off.
    tk = K if K <= tk else tk
    tn = N if N <= tn else tn
    Kp = _round_up(K, tk)
    Np = _round_up(N, tn)

    w_kn = weight.T.astype(compute_dtype)            # (K, N): lane-dense MXU RHS
    if (Kp, Np) != (K, N):
        w_kn = jnp.pad(w_kn, ((0, Kp - K), (0, Np - N)))
    b_row = jnp.pad(bias.astype(jnp.float32), (0, Np - N)).reshape(1, Np)

    fan_in = K                                        # prod(weight.shape[1:])
    scale = float(math.sqrt(2.0 / fan_in) * lr_mul) if equalized else 1.0

    return PreparedConstrainedLinear(w_kn, b_row, scale, K, N, tn, tk,
                                     compute_dtype)


# ---------------------------------------------------------------------------
# Forward
# ---------------------------------------------------------------------------

def constrained_linear_apply(x, params: PreparedConstrainedLinear, *, tm=None):
    """y = (x @ W.T + b) * scale, with W/b pre-prepared by prepare_constrained_linear."""
    *lead, K = x.shape
    assert K == params.in_features
    out_dtype = x.dtype

    kind = _device_kind()
    tm_d, _, _ = _default_tiles(kind)
    tm = tm_d if tm is None else tm

    x2 = x.reshape(-1, K)
    M = x2.shape[0]

    cdt = params.compute_dtype
    if x2.dtype != cdt:
        x2 = x2.astype(cdt)

    Kp, Np = params.w_kn.shape
    tk, tn = params.tk, params.tn
    if Kp != K:
        # Zero-pad only the reduction dim (required: garbage K columns would
        # corrupt valid outputs).  M is NOT padded — partial tiles handle it.
        x2 = jnp.pad(x2, ((0, 0), (0, Kp - K)))

    # Clamp tm to dtype-native sublane granularity (16 for bf16, 32 for 8-bit).
    sub = {1: 32, 2: 16}.get(cdt.itemsize, 8)
    tm = max(sub, min(tm, _round_up(M, sub)))
    grid = (pl.cdiv(M, tm), Np // tn, Kp // tk)

    acc_in_out = jnp.dtype(out_dtype) == jnp.float32
    if acc_in_out:
        kernel = partial(_kernel_out_acc, scale=params.scale)
        scratch = []
    else:
        kernel = partial(_kernel_scratch_acc, scale=params.scale)
        scratch = [pltpu.VMEM((tm, tn), jnp.float32)]

    xb = cdt.itemsize
    ob = jnp.dtype(out_dtype).itemsize
    cost = pl.CostEstimate(
        flops=2 * M * Np * Kp,
        transcendentals=0,
        bytes_accessed=(M * Kp * xb * (Np // tn)
                        + Np * Kp * xb * grid[0]
                        + M * Np * ob + Np * 4))

    tile_bytes = (2 * (tm * tk + tk * tn) * xb        # double-buffered x / W
                  + 2 * (tm * tn * ob + tn * 4)       # out tile + bias tile
                  + (0 if acc_in_out else tm * tn * 4))
    vmem_limit = int(min(max(2 * tile_bytes, 32 << 20), _vmem_cap(kind)))

    def call(dim_sem):
        return pl.pallas_call(
            kernel,
            out_shape=jax.ShapeDtypeStruct((M, Np), out_dtype),
            grid_spec=pltpu.PrefetchScalarGridSpec(
                num_scalar_prefetch=0,
                grid=grid,
                in_specs=[
                    pl.BlockSpec((tm, tk), lambda i, j, k: (i, k)),   # x
                    pl.BlockSpec((tk, tn), lambda i, j, k: (k, j)),   # W (K, N)
                    pl.BlockSpec((1, tn), lambda i, j, k: (0, j)),    # bias row
                ],
                out_specs=pl.BlockSpec((tm, tn), lambda i, j, k: (i, j)),
                scratch_shapes=scratch,
            ),
            compiler_params=pltpu.CompilerParams(
                dimension_semantics=dim_sem,
                vmem_limit_bytes=vmem_limit),
            cost_estimate=cost,
        )(x2, params.w_kn, params.b_row)

    try:
        out = call(_dim_semantics(kind))
    except Exception:
        # CORE_PARALLEL (v7x core sharding) unavailable on this chip/build.
        out = call((pltpu.PARALLEL, pltpu.PARALLEL, pltpu.ARBITRARY))

    if Np != params.out_features:
        out = out[:, :params.out_features]
    return out.reshape(*lead, params.out_features)


def constrained_linear(x, weight, bias, *, equalized=True, lr_mul=1.0,
                       compute_dtype="auto", tm=None, tn=None, tk=None):
    """Convenience one-shot forward. For repeated calls with the same weights,
    use prepare_constrained_linear() once + constrained_linear_apply()."""
    params = prepare_constrained_linear(weight, bias, equalized=equalized,
                                        lr_mul=lr_mul,
                                        compute_dtype=compute_dtype,
                                        tn=tn, tk=tk)
    return constrained_linear_apply(x, params, tm=tm)


if __name__ == "__main__":
    # Deterministic setup mirroring ConstrainedLayer(nn.Linear(in_f, out_f)).__init__
    key = jax.random.PRNGKey(0)
    k_x, k_w, k_x2 = jax.random.split(key, 3)

    batch, in_features, out_features = 16, 32, 16
    lr_mul = 1.0

    x = jax.random.normal(k_x, (batch, in_features), dtype=jnp.float32)

    # weight.data.normal_(0, 1); weight.data /= lrMul
    weight = jax.random.normal(k_w, (out_features, in_features),
                               dtype=jnp.float32) / lr_mul
    # bias.data.fill_(0)
    bias = jnp.zeros((out_features,), dtype=jnp.float32)

    # Pure-JAX reference of the PyTorch forward
    scale = math.sqrt(2.0 / in_features) * lr_mul
    ref = (x @ weight.T + bias) * scale

    # Exact-numerics path (f32 compute, matches PyTorch).
    params_f32 = prepare_constrained_linear(
        weight, bias, equalized=True, lr_mul=lr_mul, compute_dtype=jnp.float32)
    out = jax.block_until_ready(constrained_linear_apply(x, params_f32))
    assert out.shape == (batch, out_features)
    assert jnp.allclose(out, ref, atol=1e-5, rtol=1e-5)

    # Default fast path: bf16 compute / f32 accumulation, (K, N) weight prepared
    # once and reused across calls (no per-call pad/cast/transpose passes).
    params = prepare_constrained_linear(weight, bias, equalized=True,
                                        lr_mul=lr_mul)
    out_fast = jax.block_until_ready(constrained_linear_apply(x, params))
    assert jnp.allclose(out_fast, ref, atol=1e-1, rtol=5e-2)

    # Ragged batch (M=10): exercises a partial M tile — no activation padding pass.
    x2 = jax.random.normal(k_x2, (10, in_features), dtype=jnp.float32)
    out2 = jax.block_until_ready(constrained_linear_apply(x2, params))
    ref2 = (x2 @ weight.T + bias) * scale
    assert out2.shape == (10, out_features)
    assert jnp.allclose(out2, ref2, atol=1e-1, rtol=5e-2)

    # Non-zero bias (initBiasToZero=False case) through the convenience wrapper;
    # exercises the bias-folded-into-init path exactly.
    bias2 = jax.random.normal(jax.random.PRNGKey(1), (out_features,),
                              dtype=jnp.float32)
    out_b = jax.block_until_ready(
        constrained_linear(x, weight, bias2, equalized=True, lr_mul=lr_mul,
                           compute_dtype=jnp.float32))
    ref_b = (x @ weight.T + bias2) * scale
    assert jnp.allclose(out_b, ref_b, atol=1e-5, rtol=1e-5)

    print("KERNEL_OK")
</pallas_src>

<mosaic_0001>
module attributes {stable_mosaic.version = 11 : i64} {
  func.func @_kernel_out_acc(%arg0: i32, %arg1: i32, %arg2: i32, %arg3: memref<16x32xf32, #tpu.memory_space<vmem>>, %arg4: memref<32x16xf32, #tpu.memory_space<vmem>>, %arg5: memref<1x16xf32, #tpu.memory_space<vmem>>, %arg6: memref<16x16xf32, #tpu.memory_space<vmem>>) attributes {dimension_semantics = [#tpu.dimension_semantics<parallel>, #tpu.dimension_semantics<parallel>, #tpu.dimension_semantics<arbitrary>], iteration_bounds = array<i64: 1, 1, 1>, scalar_prefetch = 0 : i64, scratch_operands = 0 : i64, tpu.core_type = #tpu.core_type<tc>, window_params = [{transform_indices = @transform_0, window_bounds = array<i64: 16, 32>}, {transform_indices = @transform_1, window_bounds = array<i64: 32, 16>}, {transform_indices = @transform_2, window_bounds = array<i64: 1, 16>}, {transform_indices = @transform_3, window_bounds = array<i64: 16, 16>}]} {
    %c0_i32 = arith.constant 0 : i32
    %0 = arith.cmpi eq, %arg2, %c0_i32 : i32
    %1 = arith.extui %0 : i1 to i32
    %c0_i32_0 = arith.constant 0 : i32
    %2 = arith.cmpi ne, %1, %c0_i32_0 : i32
    scf.if %2 {
      %c0_10 = arith.constant 0 : index
      %c0_11 = arith.constant 0 : index
      %12 = vector.load %arg5[%c0_10, %c0_11] : memref<1x16xf32, #tpu.memory_space<vmem>>, vector<1x16xf32>
      %13 = vector.shape_cast %12 : vector<1x16xf32> to vector<1x16xf32>
      %14 = vector.broadcast %13 : vector<1x16xf32> to vector<16x16xf32>
      %c0_12 = arith.constant 0 : index
      %c0_13 = arith.constant 0 : index
      %15 = vector.load %arg6[%c0_12, %c0_13] : memref<16x16xf32, #tpu.memory_space<vmem>>, vector<16x16xf32>
      tpu.vector_store %arg6[%c0_12, %c0_13], %14 {strides = array<i32>} : memref<16x16xf32, #tpu.memory_space<vmem>>, vector<16x16xf32>,
    } else {
    }
    %c0 = arith.constant 0 : index
    %c0_1 = arith.constant 0 : index
    %3 = vector.load %arg6[%c0, %c0_1] : memref<16x16xf32, #tpu.memory_space<vmem>>, vector<16x16xf32>
    %c0_2 = arith.constant 0 : index
    %c0_3 = arith.constant 0 : index
    %4 = vector.load %arg3[%c0_2, %c0_3] : memref<16x32xf32, #tpu.memory_space<vmem>>, vector<16x32xf32>
    %c0_4 = arith.constant 0 : index
    %c0_5 = arith.constant 0 : index
    %5 = vector.load %arg4[%c0_4, %c0_5] : memref<32x16xf32, #tpu.memory_space<vmem>>, vector<32x16xf32>
    %cst = arith.constant dense<0.000000e+00> : vector<16x16xf32>
    %6 = tpu.matmul %4, %5, %cst {dimension_numbers = #tpu.dot_dimension_numbers<[1], [0], [0], [1], [0, 0, 1, 1], [], []>} : vector<16x32xf32>, vector<32x16xf32>, vector<16x16xf32> -> vector<16x16xf32>
    %7 = arith.addf %3, %6 : vector<16x16xf32>
    %c0_6 = arith.constant 0 : index
    %c0_7 = arith.constant 0 : index
    %8 = vector.load %arg6[%c0_6, %c0_7] : memref<16x16xf32, #tpu.memory_space<vmem>>, vector<16x16xf32>
    tpu.vector_store %arg6[%c0_6, %c0_7], %7 {strides = array<i32>} : memref<16x16xf32, #tpu.memory_space<vmem>>, vector<16x16xf32>,
    %c0_i32_8 = arith.constant 0 : i32
    %9 = arith.cmpi eq, %arg2, %c0_i32_8 : i32
    %10 = arith.extui %9 : i1 to i32
    %c0_i32_9 = arith.constant 0 : i32
    %11 = arith.cmpi ne, %10, %c0_i32_9 : i32
    scf.if %11 {
      %c0_10 = arith.constant 0 : index
      %c0_11 = arith.constant 0 : index
      %12 = vector.load %arg6[%c0_10, %c0_11] : memref<16x16xf32, #tpu.memory_space<vmem>>, vector<16x16xf32>
      %cst_12 = arith.constant 2.500000e-01 : f32
      %13 = vector.broadcast %cst_12 : f32 to vector<16x16xf32>
      %14 = arith.mulf %12, %13 : vector<16x16xf32>
      %c0_13 = arith.constant 0 : index
      %c0_14 = arith.constant 0 : index
      %15 = vector.load %arg6[%c0_13, %c0_14] : memref<16x16xf32, #tpu.memory_space<vmem>>, vector<16x16xf32>
      tpu.vector_store %arg6[%c0_13, %c0_14], %14 {strides = array<i32>} : memref<16x16xf32, #tpu.memory_space<vmem>>, vector<16x16xf32>,
    } else {
    }
    return
  }
  func.func @transform_0(%arg0: i32, %arg1: i32, %arg2: i32) -> (i32, i32) {
    %c0_i32 = arith.constant 0 : i32
    return %arg0, %arg2 : i32, i32
  }
  func.func @transform_1(%arg0: i32, %arg1: i32, %arg2: i32) -> (i32, i32) {
    %c0_i32 = arith.constant 0 : i32
    return %arg2, %arg1 : i32, i32
  }
  func.func @transform_2(%arg0: i32, %arg1: i32, %arg2: i32) -> (i32, i32) {
    %c0_i32 = arith.constant 0 : i32
    %c0_i32_0 = arith.constant 0 : i32
    return %c0_i32, %arg1 : i32, i32
  }
  func.func @transform_3(%arg0: i32, %arg1: i32, %arg2: i32) -> (i32, i32) {
    %c0_i32 = arith.constant 0 : i32
    return %arg0, %arg1 : i32, i32
  }
}

module attributes {stable_mosaic.version = 11 : i64} {
  func.func @_kernel_out_acc(%arg0: i32, %arg1: i32, %arg2: i32, %arg3: memref<16x32xf32, #tpu.memory_space<vmem>>, %arg4: memref<32x16xf32, #tpu.memory_space<vmem>>, %arg5: memref<1x16xf32, #tpu.memory_space<vmem>>, %arg6: memref<16x16xf32, #tpu.memory_space<vmem>>) attributes {dimension_semantics = [#tpu.dimension_semantics<parallel>, #tpu.dimension_semantics<parallel>, #tpu.dimension_semantics<arbitrary>], iteration_bounds = array<i64: 1, 1, 1>, scalar_prefetch = 0 : i64, scratch_operands = 0 : i64, tpu.core_type = #tpu.core_type<tc>, window_params = [{transform_indices = @transform_0, window_bounds = array<i64: 16, 32>}, {transform_indices = @transform_1, window_bounds = array<i64: 32, 16>}, {transform_indices = @transform_2, window_bounds = array<i64: 1, 16>}, {transform_indices = @transform_3, window_bounds = array<i64: 16, 16>}]} {
    %c0_i32 = arith.constant 0 : i32
    %0 = arith.cmpi eq, %arg2, %c0_i32 : i32
    %1 = arith.extui %0 : i1 to i32
    %c0_i32_0 = arith.constant 0 : i32
    %2 = arith.cmpi ne, %1, %c0_i32_0 : i32
    scf.if %2 {
      %c0_10 = arith.constant 0 : index
      %c0_11 = arith.constant 0 : index
      %12 = vector.load %arg5[%c0_10, %c0_11] : memref<1x16xf32, #tpu.memory_space<vmem>>, vector<1x16xf32>
      %13 = vector.shape_cast %12 : vector<1x16xf32> to vector<1x16xf32>
      %14 = vector.broadcast %13 : vector<1x16xf32> to vector<16x16xf32>
      %c0_12 = arith.constant 0 : index
      %c0_13 = arith.constant 0 : index
      %15 = vector.load %arg6[%c0_12, %c0_13] : memref<16x16xf32, #tpu.memory_space<vmem>>, vector<16x16xf32>
      tpu.vector_store %arg6[%c0_12, %c0_13], %14 {strides = array<i32>} : memref<16x16xf32, #tpu.memory_space<vmem>>, vector<16x16xf32>,
    } else {
    }
    %c0 = arith.constant 0 : index
    %c0_1 = arith.constant 0 : index
    %3 = vector.load %arg6[%c0, %c0_1] : memref<16x16xf32, #tpu.memory_space<vmem>>, vector<16x16xf32>
    %c0_2 = arith.constant 0 : index
    %c0_3 = arith.constant 0 : index
    %4 = vector.load %arg3[%c0_2, %c0_3] : memref<16x32xf32, #tpu.memory_space<vmem>>, vector<16x32xf32>
    %c0_4 = arith.constant 0 : index
    %c0_5 = arith.constant 0 : index
    %5 = vector.load %arg4[%c0_4, %c0_5] : memref<32x16xf32, #tpu.memory_space<vmem>>, vector<32x16xf32>
    %cst = arith.constant dense<0.000000e+00> : vector<16x16xf32>
    %6 = tpu.matmul %4, %5, %cst {dimension_numbers = #tpu.dot_dimension_numbers<[1], [0], [0], [1], [0, 0, 1, 1], [], []>} : vector<16x32xf32>, vector<32x16xf32>, vector<16x16xf32> -> vector<16x16xf32>
    %7 = arith.addf %3, %6 : vector<16x16xf32>
    %c0_6 = arith.constant 0 : index
    %c0_7 = arith.constant 0 : index
    %8 = vector.load %arg6[%c0_6, %c0_7] : memref<16x16xf32, #tpu.memory_space<vmem>>, vector<16x16xf32>
    tpu.vector_store %arg6[%c0_6, %c0_7], %7 {strides = array<i32>} : memref<16x16xf32, #tpu.memory_space<vmem>>, vector<16x16xf32>,
    %c0_i32_8 = arith.constant 0 : i32
    %9 = arith.cmpi eq, %arg2, %c0_i32_8 : i32
    %10 = arith.extui %9 : i1 to i32
    %c0_i32_9 = arith.constant 0 : i32
    %11 = arith.cmpi ne, %10, %c0_i32_9 : i32
    scf.if %11 {
      %c0_10 = arith.constant 0 : index
      %c0_11 = arith.constant 0 : index
      %12 = vector.load %arg6[%c0_10, %c0_11] : memref<16x16xf32, #tpu.memory_space<vmem>>, vector<16x16xf32>
      %cst_12 = arith.constant 2.500000e-01 : f32
      %13 = vector.broadcast %cst_12 : f32 to vector<16x16xf32>
      %14 = arith.mulf %12, %13 : vector<16x16xf32>
      %c0_13 = arith.constant 0 : index
      %c0_14 = arith.constant 0 : index
      %15 = vector.load %arg6[%c0_13, %c0_14] : memref<16x16xf32, #tpu.memory_space<vmem>>, vector<16x16xf32>
      tpu.vector_store %arg6[%c0_13, %c0_14], %14 {strides = array<i32>} : memref<16x16xf32, #tpu.memory_space<vmem>>, vector<16x16xf32>,
    } else {
    }
    return
  }
  func.func @transform_0(%arg0: i32, %arg1: i32, %arg2: i32) -> (i32, i32) {
    %c0_i32 = arith.constant 0 : i32
    return %arg0, %arg2 : i32, i32
  }
  func.func @transform_1(%arg0: i32, %arg1: i32, %arg2: i32) -> (i32, i32) {
    %c0_i32 = arith.constant 0 : i32
    return %arg2, %arg1 : i32, i32
  }
  func.func @transform_2(%arg0: i32, %arg1: i32, %arg2: i32) -> (i32, i32) {
    %c0_i32 = arith.constant 0 : i32
    %c0_i32_0 = arith.constant 0 : i32
    return %c0_i32, %arg1 : i32, i32
  }
  func.func @transform_3(%arg0: i32, %arg1: i32, %arg2: i32) -> (i32, i32) {
    %c0_i32 = arith.constant 0 : i32
    return %arg0, %arg1 : i32, i32
  }
}

</mosaic_0001>

<bundles_post_ra>
// kernel: tpu_custom_call.1
= control target key start
LH: loop header
LB: loop body
LE: loop exit
PB: predicated region body
PF: predicated region fallthrough
CT: control target
= control target key end

     0   :  { %vm37_vm0 = vcmask 261120   ;;  %vm26_vm1 = vcmask 130048   ;;  %s268_s0 = inlined_call_operand.vmem [shape: f32[16,32], index: 0, kind: input, shape index: {}]   ;;  %s269_s1 = inlined_call_operand.vmem [shape: f32[32,16], index: 1, kind: input, shape index: {}]   ;;  %s270_s2 = inlined_call_operand.vmem [shape: f32[1,16], index: 2, kind: input, shape index: {}]   ;;  %s271_s3 = inlined_call_operand.hbm [shape: f32[16,16], index: 3, kind: output, shape index: {}]  }
   0x1   :  { %v33_v0 = vld [vmem:[%s269_s1] sm:$0xff]  ;;  %v34_v1 = vld [vmem:[%s269_s1 + $0x8] sm:$0xff]  ;;  %v35_v2 = vld [vmem:[%s269_s1 + $0x10] sm:$0xff] }
   0x2   :  { %v169_v3 = vpack.c.bf16 %v34_v1, %v33_v0  ;;  %v36_v4 = vld [vmem:[%s269_s1 + $0x18] sm:$0xff]  ;;  %v31_v5 = vld [vmem:[%s268_s0] sm:$0xff] }
   0x3   :  { %v173_v6 = vpack.c.bf16 %v36_v4, %v35_v2  ;;  %166 = vmatprep.mubr.msk.f32.mxu0 %vm37_vm0, %v31_v5  ;;  %v149_v7 = vld [vmem:[%s270_s2] ss:$0 sm:$0xff] }
   0x4   :  { %8 = vsyncpa [#allocation3], 0  ;;  %170 = vmatprep.subr.bf16.mxu0 %v169_v3  ;;  %28 = vst.msk [vmem:[#allocation2 + $0x8] sm:$0xff] %vm26_vm1, %v149_v7  ;;  %v32_v8 = vld [vmem:[%s268_s0 + $0x8] sm:$0xff]  ;;  %s204_s2 = smov [#allocation2]  }
   0x5   :  { %27 = vst.msk [vmem:[#allocation2] sm:$0xff] %vm26_vm1, %v149_v7  ;;  %172 = vmatpush3.bf16.msra.mxu0 %v169_v3  ;;  %s138_s25 = sshll.u32 %s204_s2, 4  ;;  %s139_s25 = int_to_ptr.vmem [resolvable:$true] %s138_s25 }
   0x6   :  { %174 = vmatprep.subr.bf16.mxu0 %v173_v6  ;;  %s180_s0 = scalar_lea.vmem %s139_s25, 256  ;;  %p185_p1 = scmp.lt.s32.totalorder %s139_s25, %s139_s25 }
   0x7   :  { %p181_p0 = scmp.ne.s32.totalorder %s139_s25, %s180_s0  ;;  %p186_p2 = scmp.lt.s32.totalorder %s180_s0, %s180_s0 }
   0x9   :  { %176 = vmatpush3.bf16.msra.mxu0 %v173_v6  ;;  %p187_p3 = por %p186_p2, %p185_p1 }
   0xb   :  { %v30_v9 = vld [vmem:[#allocation2 + $0x8] sm:$0xff]  ;;  %p188_p4 = pnand %p187_p3, %p181_p0 }
   0xc   :  { %167 = vmatmul.mubr.msk.f32.vlgmr.msra.gmra.mrb[0].mxu0 %vm37_vm0, %v32_v8  ;;  %v29_v10 = vld [vmem:[#allocation2] sm:$0xff] }
  0xdf   :  { %v168_v11 = vpop.f32.mrb[0].mxu0 }
  0xe0   :  { %v120_v12 = vadd.f32 %v168_v11, %v30_v9  ;;  %v110_v13 = vpop.f32.mrb[1].mxu0 }
  0xe1   :  { %v119_v14 = vadd.f32 %v110_v13, %v29_v10 }
  0xe2   :  { %123 = vst.msk [vmem:[#allocation2 + $0x8] sm:$0xff] %vm26_vm1, %v120_v12 }
  0xe3   :  { %122 = vst.msk [vmem:[#allocation2] sm:$0xff] %vm26_vm1, %v119_v14 }
  0xe9   :  { %v128_v15 = vld [vmem:[#allocation2 + $0x8] sm:$0xff] }
  0xea   :  { %v127_v16 = vld [vmem:[#allocation2] sm:$0xff]  ;;  %v130_v17 = vmul.f32 0.25, %v128_v15 }
  0xeb   :  { %v129_v18 = vmul.f32 0.25, %v127_v16 }
  0xec   :  { %132 = vst.msk [vmem:[#allocation2 + $0x8] sm:$0xff] %vm26_vm1, %v130_v17 }
  0xed   :  { %131 = vst.msk [vmem:[#allocation2] sm:$0xff] %vm26_vm1, %v129_v18 }
  0xee   :  { %191 = shalt.err (!%p188_p4)
}
  0xef   :  { %s192_s28 = scalar_lea.hbm %s271_s3, 256 }
  0xf0   :  { %p193_p5 = scmp.ne.s32.totalorder %s271_s3, %s192_s28  ;;  %p196_p6 = scmp.lt.u32.totalorder %s192_s28, %s271_s3 }
  0xf2   :  { %p198_p7 = pnand %p196_p6, %p193_p5 }
  0xf4   :  { %201 = shalt.err (!%p198_p7)
}
  0xf5   :  { %s205_s6 = smov 128   ;;  %s206_s7 = smov 8  }
  0xf6   :  { %144 = dma.vmem_to_hbm [thread:$0]  %s139_s25, 256, %s271_s3, [#allocation3], %s205_s6, %s205_s6, %s206_s7  }
  0xf7   :  { %202 = dma.done.wait [#allocation3], 256  }
  0xf8   :  { %203 = vsyncadd [#allocation3], 4294967040 }
  0xf9   :  { %148 = vsyncpa [#allocation3], 1 }

// kernel: tpu_custom_call.1
= control target key start
LH: loop header
LB: loop body
LE: loop exit
PB: predicated region body
PF: predicated region fallthrough
CT: control target
= control target key end

     0   :  { %vm37_vm0 = vcmask 261120   ;;  %vm26_vm1 = vcmask 130048   ;;  %s268_s0 = inlined_call_operand.vmem [shape: f32[16,32], index: 0, kind: input, shape index: {}]   ;;  %s269_s1 = inlined_call_operand.vmem [shape: f32[32,16], index: 1, kind: input, shape index: {}]   ;;  %s270_s2 = inlined_call_operand.vmem [shape: f32[1,16], index: 2, kind: input, shape index: {}]   ;;  %s271_s3 = inlined_call_operand.hbm [shape: f32[16,16], index: 3, kind: output, shape index: {}]  }
   0x1   :  { %v33_v0 = vld [vmem:[%s269_s1] sm:$0xff]  ;;  %v34_v1 = vld [vmem:[%s269_s1 + $0x8] sm:$0xff]  ;;  %v35_v2 = vld [vmem:[%s269_s1 + $0x10] sm:$0xff] }
   0x2   :  { %v169_v3 = vpack.c.bf16 %v34_v1, %v33_v0  ;;  %v36_v4 = vld [vmem:[%s269_s1 + $0x18] sm:$0xff]  ;;  %v31_v5 = vld [vmem:[%s268_s0] sm:$0xff] }
   0x3   :  { %v173_v6 = vpack.c.bf16 %v36_v4, %v35_v2  ;;  %166 = vmatprep.mubr.msk.f32.mxu0 %vm37_vm0, %v31_v5  ;;  %v149_v7 = vld [vmem:[%s270_s2] ss:$0 sm:$0xff] }
   0x4   :  { %8 = vsyncpa [#allocation3], 0  ;;  %170 = vmatprep.subr.bf16.mxu0 %v169_v3  ;;  %28 = vst.msk [vmem:[#allocation2 + $0x8] sm:$0xff] %vm26_vm1, %v149_v7  ;;  %v32_v8 = vld [vmem:[%s268_s0 + $0x8] sm:$0xff]  ;;  %s204_s2 = smov [#allocation2]  }
   0x5   :  { %27 = vst.msk [vmem:[#allocation2] sm:$0xff] %vm26_vm1, %v149_v7  ;;  %172 = vmatpush3.bf16.msra.mxu0 %v169_v3  ;;  %s138_s25 = sshll.u32 %s204_s2, 4  ;;  %s139_s25 = int_to_ptr.vmem [resolvable:$true] %s138_s25 }
   0x6   :  { %174 = vmatprep.subr.bf16.mxu0 %v173_v6  ;;  %s180_s0 = scalar_lea.vmem %s139_s25, 256  ;;  %p185_p1 = scmp.lt.s32.totalorder %s139_s25, %s139_s25 }
   0x7   :  { %p181_p0 = scmp.ne.s32.totalorder %s139_s25, %s180_s0  ;;  %p186_p2 = scmp.lt.s32.totalorder %s180_s0, %s180_s0 }
   0x9   :  { %176 = vmatpush3.bf16.msra.mxu0 %v173_v6  ;;  %p187_p3 = por %p186_p2, %p185_p1 }
   0xb   :  { %v30_v9 = vld [vmem:[#allocation2 + $0x8] sm:$0xff]  ;;  %p188_p4 = pnand %p187_p3, %p181_p0 }
   0xc   :  { %167 = vmatmul.mubr.msk.f32.vlgmr.msra.gmra.mrb[0].mxu0 %vm37_vm0, %v32_v8  ;;  %v29_v10 = vld [vmem:[#allocation2] sm:$0xff] }
  0xdf   :  { %v168_v11 = vpop.f32.mrb[0].mxu0 }
  0xe0   :  { %v120_v12 = vadd.f32 %v168_v11, %v30_v9  ;;  %v110_v13 = vpop.f32.mrb[1].mxu0 }
  0xe1   :  { %v119_v14 = vadd.f32 %v110_v13, %v29_v10 }
  0xe2   :  { %123 = vst.msk [vmem:[#allocation2 + $0x8] sm:$0xff] %vm26_vm1, %v120_v12 }
  0xe3   :  { %122 = vst.msk [vmem:[#allocation2] sm:$0xff] %vm26_vm1, %v119_v14 }
  0xe9   :  { %v128_v15 = vld [vmem:[#allocation2 + $0x8] sm:$0xff] }
  0xea   :  { %v127_v16 = vld [vmem:[#allocation2] sm:$0xff]  ;;  %v130_v17 = vmul.f32 0.25, %v128_v15 }
  0xeb   :  { %v129_v18 = vmul.f32 0.25, %v127_v16 }
  0xec   :  { %132 = vst.msk [vmem:[#allocation2 + $0x8] sm:$0xff] %vm26_vm1, %v130_v17 }
  0xed   :  { %131 = vst.msk [vmem:[#allocation2] sm:$0xff] %vm26_vm1, %v129_v18 }
  0xee   :  { %191 = shalt.err (!%p188_p4)
}
  0xef   :  { %s192_s28 = scalar_lea.hbm %s271_s3, 256 }
  0xf0   :  { %p193_p5 = scmp.ne.s32.totalorder %s271_s3, %s192_s28  ;;  %p196_p6 = scmp.lt.u32.totalorder %s192_s28, %s271_s3 }
  0xf2   :  { %p198_p7 = pnand %p196_p6, %p193_p5 }
  0xf4   :  { %201 = shalt.err (!%p198_p7)
}
  0xf5   :  { %s205_s6 = smov 128   ;;  %s206_s7 = smov 8  }
  0xf6   :  { %144 = dma.vmem_to_hbm [thread:$0]  %s139_s25, 256, %s271_s3, [#allocation3], %s205_s6, %s205_s6, %s206_s7  }
  0xf7   :  { %202 = dma.done.wait [#allocation3], 256  }
  0xf8   :  { %203 = vsyncadd [#allocation3], 4294967040 }
  0xf9   :  { %148 = vsyncpa [#allocation3], 1 }

</bundles_post_ra>
